<compile_context>
chip_gen: v7x
topology: tpu7x:2x2x1
jax: 0.10.0
libtpu: 0.0.40
codegen_flags: <defaults>
</compile_context>

<pallas_src>
import functools

import jax
import jax.numpy as jnp
from jax import lax
from jax.experimental import pallas as pl
from jax.experimental.pallas import tpu as pltpu


# ---------------------------------------------------------------------------
# Kernels
# ---------------------------------------------------------------------------

def _pool_kernel_fused(x_ref, p_ref, o_ref, *, inv_k, precision):
    """out = (x @ P) * inv_k  --  one MXU contraction per channel block.

    x_ref: (TC, H*W)      channel block, spatial flattened on the lane axis
    p_ref: (H*W, oH*oW)   0/1 window-membership matrix (kron(M_H, M_W))
    o_ref: (TC, oH*oW)
    """
    acc = jnp.dot(x_ref[...], p_ref[...],
                  preferred_element_type=jnp.float32, precision=precision)
    o_ref[...] = (acc * inv_k).astype(o_ref.dtype)


def _pool_kernel_factored(x_ref, mw_ref, o_ref, y_scratch, *, kh, inv_k, precision):
    """Factored pooling for large spatial sizes (kron(M_H, M_W) would be huge).

    Step 1 (MXU): pool W:   y = x @ M_W          (rows ordered (channel, h))
    Step 2 (VPU): pool H:   out[c, oh] = sum_r y[c, oh*kh + r]
                  implemented as kh sublane-strided loads from VMEM scratch.

    x_ref:     (TC*H, W)
    mw_ref:    (W, oW)      0/1 membership matrix for the W axis
    o_ref:     (TC*oH, oW)
    y_scratch: (TC*H, oW)   f32 VMEM scratch holding the W-pooled partials
    """
    y_scratch[...] = jnp.dot(x_ref[...], mw_ref[...],
                             preferred_element_type=jnp.float32,
                             precision=precision)
    out_rows = o_ref.shape[0]
    acc = y_scratch[pl.ds(0, out_rows, stride=kh), :]
    for r in range(1, kh):  # kh is a static Python int -> fully unrolled
        acc = acc + y_scratch[pl.ds(r, out_rows, stride=kh), :]
    o_ref[...] = (acc * inv_k).astype(o_ref.dtype)


# ---------------------------------------------------------------------------
# Tiling / VMEM policy helpers (all static, trace-time)
# ---------------------------------------------------------------------------

def _window_membership(in_size: int, out_size: int, dtype) -> jnp.ndarray:
    """(in_size, out_size) 0/1 matrix: M[i, o] = 1 iff i // k == o (k = in/out)."""
    k = in_size // out_size
    i_idx = jnp.arange(in_size)[:, None]
    o_idx = jnp.arange(out_size)[None, :]
    return ((i_idx // k) == o_idx).astype(dtype)


def _sublane(dtype) -> int:
    """Sublane packing for the dtype: 8 (f32) / 16 (bf16) / 32 (int8/fp8)."""
    return max(8, 32 // jnp.dtype(dtype).itemsize)


def _vmem_capacity_bytes() -> int:
    """Physical VMEM per TensorCore; conservative 64 MiB (v7x) fallback."""
    try:
        cap = int(getattr(pltpu.get_tpu_info(), "vmem_capacity_bytes", 0))
        if cap > 0:
            return cap
    except Exception:
        pass
    return 64 << 20


def _gen_params():
    """Generation-aware (input-block byte budget, vmem_limit cap)."""
    cap = _vmem_capacity_bytes()
    if cap >= (96 << 20):        # v5e / v6e: 128 MiB VMEM -> big blocks
        return 12 << 20, 96 << 20
    return 5 << 20, 40 << 20     # v7x: 64 MiB VMEM per TensorCore


def _choose_channel_tile(nc: int, row_bytes: int, sublane: int, budget: int) -> int:
    """Channels per grid step, sized purely by the byte budget (no flat cap),
    rounded to the dtype's sublane packing.  When the whole extent fits in one
    block, still split into two blocks (>= 2 MiB each) so both v7x TensorCores
    get work via the 'parallel' channel axis."""
    tc = max(1, budget // max(1, row_bytes))
    if tc >= nc:
        half = -(-nc // 2)
        half = -(-half // sublane) * sublane
        if 0 < half < nc and half * row_bytes >= (2 << 20):
            return half
        return nc
    tc = (tc // sublane) * sublane
    if tc <= 0:
        tc = min(sublane, nc)
    return tc


def _vmem_limit(need_bytes: int, limit_cap: int) -> int:
    """Request at least the actual need (never clamp below it), floor 32 MiB,
    capped per generation when the need allows."""
    limit = max(need_bytes, 32 << 20)
    if limit > limit_cap:
        limit = max(need_bytes, limit_cap)
    return int(limit)


def _invariant_spec(block_shape, single_buffered: bool) -> pl.BlockSpec:
    """BlockSpec for a grid-invariant operand (constant index_map).  With
    single_buffered=True it is held once in VMEM (pl.Buffered(1)) instead of
    being double-buffered."""
    ndim = len(block_shape)
    index_map = lambda i, _n=ndim: (0,) * _n
    if single_buffered:
        return pl.BlockSpec(block_shape, index_map, pipeline_mode=pl.Buffered(1))
    return pl.BlockSpec(block_shape, index_map)


# ---------------------------------------------------------------------------
# pallas_call wrappers
# ---------------------------------------------------------------------------

@functools.partial(jax.jit, static_argnums=(1, 2))
def _pool_fused(x, output_size, single_buffer_p):
    out_H, out_W = output_size
    N, C, H, W = x.shape
    kh, kw = H // out_H, W // out_W
    NC, HW, oHW = N * C, H * W, out_H * out_W
    isz = jnp.dtype(x.dtype).itemsize
    budget, limit_cap = _gen_params()

    # Fused pooling matrix P[h*W + w, oh*out_W + ow] = 1 iff (h, w) lies in
    # output window (oh, ow).  Kept in the input dtype so the MXU runs a
    # native-dtype matmul; the 1/(kh*kw) scale is applied on the f32 result.
    p = jnp.kron(_window_membership(H, out_H, x.dtype),
                 _window_membership(W, out_W, x.dtype))           # (HW, oHW)
    x_flat = x.reshape(NC, HW)

    tc = _choose_channel_tile(NC, HW * isz, _sublane(x.dtype), budget)
    grid = (pl.cdiv(NC, tc),)

    p_bufs = 1 if single_buffer_p else 2
    need = (2 * tc * HW + 2 * tc * oHW) * isz + p_bufs * HW * oHW * isz + (4 << 20)
    precision = lax.Precision.HIGHEST if x.dtype == jnp.float32 else None

    out_flat = pl.pallas_call(
        functools.partial(_pool_kernel_fused,
                          inv_k=1.0 / float(kh * kw), precision=precision),
        out_shape=jax.ShapeDtypeStruct((NC, oHW), x.dtype),
        grid_spec=pltpu.PrefetchScalarGridSpec(
            num_scalar_prefetch=0,
            grid=grid,
            in_specs=[
                pl.BlockSpec((tc, HW), lambda i: (i, 0)),      # channel block
                _invariant_spec((HW, oHW), single_buffer_p),   # P, VMEM-resident
            ],
            out_specs=pl.BlockSpec((tc, oHW), lambda i: (i, 0)),
        ),
        compiler_params=pltpu.CompilerParams(
            dimension_semantics=("parallel",),
            vmem_limit_bytes=_vmem_limit(need, limit_cap),
        ),
    )(x_flat, p)
    return out_flat.reshape(N, C, out_H, out_W)


@functools.partial(jax.jit, static_argnums=(1, 2))
def _pool_factored(x, output_size, single_buffer_m):
    out_H, out_W = output_size
    N, C, H, W = x.shape
    kh, kw = H // out_H, W // out_W
    NC = N * C
    isz = jnp.dtype(x.dtype).itemsize
    budget, limit_cap = _gen_params()

    mw = _window_membership(W, out_W, x.dtype)                    # (W, oW)
    x_rows = x.reshape(NC * H, W)                                 # free HBM view

    # Per-channel bytes: input rows + the f32 W-pooled scratch rows.
    row_bytes = H * W * isz + H * out_W * 4
    tc = _choose_channel_tile(NC, row_bytes, _sublane(x.dtype), budget)
    grid = (pl.cdiv(NC, tc),)

    m_bufs = 1 if single_buffer_m else 2
    need = ((2 * tc * H * W + 2 * tc * out_H * out_W) * isz
            + tc * H * out_W * 4 + m_bufs * W * out_W * isz + (4 << 20))
    precision = lax.Precision.HIGHEST if x.dtype == jnp.float32 else None

    out_rows = pl.pallas_call(
        functools.partial(_pool_kernel_factored, kh=kh,
                          inv_k=1.0 / float(kh * kw), precision=precision),
        out_shape=jax.ShapeDtypeStruct((NC * out_H, out_W), x.dtype),
        grid_spec=pltpu.PrefetchScalarGridSpec(
            num_scalar_prefetch=0,
            grid=grid,
            in_specs=[
                pl.BlockSpec((tc * H, W), lambda i: (i, 0)),    # channel block
                _invariant_spec((W, out_W), single_buffer_m),   # M_W
            ],
            out_specs=pl.BlockSpec((tc * out_H, out_W), lambda i: (i, 0)),
            scratch_shapes=[pltpu.VMEM((tc * H, out_W), jnp.float32)],
        ),
        compiler_params=pltpu.CompilerParams(
            dimension_semantics=("parallel",),
            vmem_limit_bytes=_vmem_limit(need, limit_cap),
        ),
    )(x_rows, mw)
    return out_rows.reshape(N, C, out_H, out_W)


def adaptive_avg_pool2d(x: jnp.ndarray, output_size) -> jnp.ndarray:
    """Pallas TPU adaptive average pooling, equivalent to the PyTorch module."""
    if isinstance(output_size, int):
        output_size = (output_size, output_size)
    out_H, out_W = int(output_size[0]), int(output_size[1])

    N, C, H, W = x.shape
    if H % out_H != 0 or W % out_W != 0:
        raise ValueError(
            "For this efficient implementation, H and W must be divisible by "
            "out_H and out_W.")

    # Fused single-matmul path while the kron pooling matrix stays comfortably
    # VMEM resident; otherwise the factored (W-pool matmul + strided H-sum)
    # path, whose pooling weights are only W*oW bytes.
    _, limit_cap = _gen_params()
    p_bytes = (H * W) * (out_H * out_W) * jnp.dtype(x.dtype).itemsize
    impl = _pool_fused if p_bytes <= min(24 << 20, limit_cap // 2) else _pool_factored

    try:
        # Preferred config: invariant pooling weights single-buffered in VMEM.
        return impl(x, (out_H, out_W), True)
    except Exception:
        # Safety net (e.g. if pipeline_mode=pl.Buffered(1) is unsupported):
        # fall back to default double-buffering of the small weight matrices.
        return impl(x, (out_H, out_W), False)


# ---------------------------------------------------------------------------
# Reference + self-test
# ---------------------------------------------------------------------------

def _reference(x: jnp.ndarray, output_size) -> jnp.ndarray:
    """Pure-JAX reference matching the PyTorch unfold+mean semantics."""
    if isinstance(output_size, int):
        output_size = (output_size, output_size)
    out_H, out_W = output_size
    N, C, H, W = x.shape
    kh, kw = H // out_H, W // out_W
    return x.reshape(N, C, out_H, kh, out_W, kw).mean(axis=(3, 5))


if __name__ == "__main__":
    key = jax.random.PRNGKey(0)
    k1, k2, k3 = jax.random.split(key, 3)

    # 1) Small fused-path case (the module's canonical shapes).
    x1 = jax.random.normal(k1, (2, 4, 16, 16), dtype=jnp.float32)
    o1 = jax.block_until_ready(adaptive_avg_pool2d(x1, 4))
    r1 = _reference(x1, 4)
    assert o1.shape == (2, 4, 4, 4) and o1.dtype == x1.dtype
    assert jnp.allclose(o1, r1, atol=1e-5, rtol=1e-5), "fused path mismatch"

    # 2) Larger spatial case whose kron matrix (64 MiB) forces the factored path.
    x2 = jax.random.normal(k2, (1, 16, 128, 128), dtype=jnp.float32)
    o2 = jax.block_until_ready(adaptive_avg_pool2d(x2, (32, 32)))
    r2 = _reference(x2, (32, 32))
    assert o2.shape == (1, 16, 32, 32) and o2.dtype == x2.dtype
    assert jnp.allclose(o2, r2, atol=1e-5, rtol=1e-5), "factored path mismatch"

    # 3) bf16 fused case (native-dtype MXU matmul, f32 accumulate).
    x3 = jax.random.normal(k3, (4, 64, 16, 16), dtype=jnp.bfloat16)
    o3 = jax.block_until_ready(adaptive_avg_pool2d(x3, 2))
    r3 = _reference(x3.astype(jnp.float32), 2)
    assert o3.shape == (4, 64, 2, 2) and o3.dtype == x3.dtype
    assert jnp.allclose(o3.astype(jnp.float32), r3, atol=3e-2, rtol=3e-2), \
        "bf16 fused path mismatch"

    print("KERNEL_OK")
</pallas_src>

<mosaic_0001>
module attributes {stable_mosaic.version = 11 : i64} {
  func.func @_pool_kernel_fused(%arg0: i32, %arg1: memref<8x256xf32, #tpu.memory_space<vmem>>, %arg2: memref<256x16xf32, #tpu.memory_space<vmem>>, %arg3: memref<8x16xf32, #tpu.memory_space<vmem>>) attributes {dimension_semantics = [#tpu.dimension_semantics<parallel>], iteration_bounds = array<i64: 1>, scalar_prefetch = 0 : i64, scratch_operands = 0 : i64, tpu.core_type = #tpu.core_type<tc>, window_params = [{transform_indices = @transform_0, window_bounds = array<i64: 8, 256>}, {pipeline_mode = #tpu.pipeline_mode<synchronous>, transform_indices = @transform_1, window_bounds = array<i64: 256, 16>}, {transform_indices = @transform_2, window_bounds = array<i64: 8, 16>}]} {
    %c0 = arith.constant 0 : index
    %c0_0 = arith.constant 0 : index
    %0 = vector.load %arg1[%c0, %c0_0] : memref<8x256xf32, #tpu.memory_space<vmem>>, vector<8x256xf32>
    %c0_1 = arith.constant 0 : index
    %c0_2 = arith.constant 0 : index
    %1 = vector.load %arg2[%c0_1, %c0_2] : memref<256x16xf32, #tpu.memory_space<vmem>>, vector<256x16xf32>
    %cst = arith.constant dense<0.000000e+00> : vector<8x16xf32>
    %2 = tpu.matmul %0, %1, %cst {dimension_numbers = #tpu.dot_dimension_numbers<[1], [0], [0], [1], [0, 0, 1, 1], [], []>, precision = #tpu.contract_precision<fp32>} : vector<8x256xf32>, vector<256x16xf32>, vector<8x16xf32> -> vector<8x16xf32>
    %cst_3 = arith.constant 6.250000e-02 : f32
    %3 = vector.broadcast %cst_3 : f32 to vector<8x16xf32>
    %4 = arith.mulf %2, %3 : vector<8x16xf32>
    %c0_4 = arith.constant 0 : index
    %c0_5 = arith.constant 0 : index
    %5 = vector.load %arg3[%c0_4, %c0_5] : memref<8x16xf32, #tpu.memory_space<vmem>>, vector<8x16xf32>
    tpu.vector_store %arg3[%c0_4, %c0_5], %4 {strides = array<i32>} : memref<8x16xf32, #tpu.memory_space<vmem>>, vector<8x16xf32>,
    return
  }
  func.func @transform_0(%arg0: i32) -> (i32, i32) {
    %c0_i32 = arith.constant 0 : i32
    %c0_i32_0 = arith.constant 0 : i32
    return %arg0, %c0_i32 : i32, i32
  }
  func.func @transform_1(%arg0: i32) -> (i32, i32) {
    %c0_i32 = arith.constant 0 : i32
    %c0_i32_0 = arith.constant 0 : i32
    %c0_i32_1 = arith.constant 0 : i32
    return %c0_i32, %c0_i32_0 : i32, i32
  }
  func.func @transform_2(%arg0: i32) -> (i32, i32) {
    %c0_i32 = arith.constant 0 : i32
    %c0_i32_0 = arith.constant 0 : i32
    return %arg0, %c0_i32 : i32, i32
  }
}

module attributes {stable_mosaic.version = 11 : i64} {
  func.func @_pool_kernel_fused(%arg0: i32, %arg1: memref<8x256xf32, #tpu.memory_space<vmem>>, %arg2: memref<256x16xf32, #tpu.memory_space<vmem>>, %arg3: memref<8x16xf32, #tpu.memory_space<vmem>>) attributes {dimension_semantics = [#tpu.dimension_semantics<parallel>], iteration_bounds = array<i64: 1>, scalar_prefetch = 0 : i64, scratch_operands = 0 : i64, tpu.core_type = #tpu.core_type<tc>, window_params = [{transform_indices = @transform_0, window_bounds = array<i64: 8, 256>}, {pipeline_mode = #tpu.pipeline_mode<synchronous>, transform_indices = @transform_1, window_bounds = array<i64: 256, 16>}, {transform_indices = @transform_2, window_bounds = array<i64: 8, 16>}]} {
    %c0 = arith.constant 0 : index
    %c0_0 = arith.constant 0 : index
    %0 = vector.load %arg1[%c0, %c0_0] : memref<8x256xf32, #tpu.memory_space<vmem>>, vector<8x256xf32>
    %c0_1 = arith.constant 0 : index
    %c0_2 = arith.constant 0 : index
    %1 = vector.load %arg2[%c0_1, %c0_2] : memref<256x16xf32, #tpu.memory_space<vmem>>, vector<256x16xf32>
    %cst = arith.constant dense<0.000000e+00> : vector<8x16xf32>
    %2 = tpu.matmul %0, %1, %cst {dimension_numbers = #tpu.dot_dimension_numbers<[1], [0], [0], [1], [0, 0, 1, 1], [], []>, precision = #tpu.contract_precision<fp32>} : vector<8x256xf32>, vector<256x16xf32>, vector<8x16xf32> -> vector<8x16xf32>
    %cst_3 = arith.constant 6.250000e-02 : f32
    %3 = vector.broadcast %cst_3 : f32 to vector<8x16xf32>
    %4 = arith.mulf %2, %3 : vector<8x16xf32>
    %c0_4 = arith.constant 0 : index
    %c0_5 = arith.constant 0 : index
    %5 = vector.load %arg3[%c0_4, %c0_5] : memref<8x16xf32, #tpu.memory_space<vmem>>, vector<8x16xf32>
    tpu.vector_store %arg3[%c0_4, %c0_5], %4 {strides = array<i32>} : memref<8x16xf32, #tpu.memory_space<vmem>>, vector<8x16xf32>,
    return
  }
  func.func @transform_0(%arg0: i32) -> (i32, i32) {
    %c0_i32 = arith.constant 0 : i32
    %c0_i32_0 = arith.constant 0 : i32
    return %arg0, %c0_i32 : i32, i32
  }
  func.func @transform_1(%arg0: i32) -> (i32, i32) {
    %c0_i32 = arith.constant 0 : i32
    %c0_i32_0 = arith.constant 0 : i32
    %c0_i32_1 = arith.constant 0 : i32
    return %c0_i32, %c0_i32_0 : i32, i32
  }
  func.func @transform_2(%arg0: i32) -> (i32, i32) {
    %c0_i32 = arith.constant 0 : i32
    %c0_i32_0 = arith.constant 0 : i32
    return %arg0, %c0_i32 : i32, i32
  }
}

</mosaic_0001>

<bundles_post_ra>
// kernel: _pool_fused.1
= control target key start
LH: loop header
LB: loop body
LE: loop exit
PB: predicated region body
PF: predicated region fallthrough
CT: control target
= control target key end

     0   :  { %vm908_vm0 = vcmask 130048   ;;  %s1834_s1 = inlined_call_operand.vmem [shape: f32[256,16], index: 1, kind: input, shape index: {}]   ;;  %s1835_s0 = inlined_call_operand.vmem [shape: f32[8,256], index: 0, kind: input, shape index: {}]   ;;  %s1836_s2 = inlined_call_operand.vmem [shape: f32[8,16], index: 2, kind: output, shape index: {}]  }
   0x1   :  { %v29_v0 = vld [vmem:[%s1834_s1 + $0x80] sm:$0xff]  ;;  %v30_v1 = vld [vmem:[%s1834_s1 + $0x88] sm:$0xff]  ;;  %v31_v7 = vld [vmem:[%s1834_s1 + $0x90] sm:$0xff] }
   0x2   :  { %v13_v2 = vld [vmem:[%s1834_s1] sm:$0xff]  ;;  %v94_v3 = vand.u32 4294901760, %v29_v0  ;;  %v97_v4 = vand.u32 4294901760, %v30_v1  ;;  %v14_v5 = vld [vmem:[%s1834_s1 + $0x8] sm:$0xff]  ;;  %v32_v8 = vld [vmem:[%s1834_s1 + $0x98] sm:$0xff]  ;;  %v100_v10 = vand.u32 4294901760, %v31_v7 }
   0x3   :  { %v46_v6 = vand.u32 4294901760, %v13_v2  ;;  %v49_v9 = vand.u32 4294901760, %v14_v5  ;;  %v103_v11 = vand.u32 4294901760, %v32_v8  ;;  %v15_v12 = vld [vmem:[%s1834_s1 + $0x10] sm:$0xff]  ;;  %v16_v13 = vld [vmem:[%s1834_s1 + $0x18] sm:$0xff]  ;;  %v33_v18 = vld [vmem:[%s1834_s1 + $0xa0] sm:$0xff] }
   0x4   :  { %v1355_v14 = vpack.c.bf16 %v97_v4, %v94_v3  ;;  %v52_v16 = vand.u32 4294901760, %v15_v12  ;;  %v55_v17 = vand.u32 4294901760, %v16_v13  ;;  %v34_v19 = vld [vmem:[%s1834_s1 + $0xa8] sm:$0xff]  ;;  %v17_v23 = vld [vmem:[%s1834_s1 + $0x20] sm:$0xff]  ;;  %v1378_v25 = vsub.f32 %v31_v7, %v100_v10  ;;  %v35_v37 = vld [vmem:[%s1834_s1 + $0xb0] sm:$0xff] }
   0x5   :  { %v1357_v15 = vsub.f32 %v13_v2, %v46_v6  ;;  %v1365_v20 = vpack.c.bf16 %v49_v9, %v46_v6  ;;  %v1367_v21 = vsub.f32 %v14_v5, %v49_v9  ;;  %v1369_v22 = vpack.c.bf16 %v103_v11, %v100_v10  ;;  %v18_v24 = vld [vmem:[%s1834_s1 + $0x28] sm:$0xff]  ;;  %v36_v42 = vld [vmem:[%s1834_s1 + $0xb8] sm:$0xff]  ;;  %v19_v55 = vld [vmem:[%s1834_s1 + $0x30] sm:$0xff] }
   0x6   :  { %1125 = vmatprep.subr.bf16.mxu0 %v1355_v14  ;;  %v1380_v26 = vsub.f32 %v32_v8, %v103_v11  ;;  %v1382_v27 = vpack.c.bf16 %v55_v17, %v52_v16  ;;  %v1384_v28 = vsub.f32 %v15_v12, %v52_v16  ;;  %v106_v29 = vand.u32 4294901760, %v33_v18  ;;  %v20_v56 = vld [vmem:[%s1834_s1 + $0x38] sm:$0xff]  ;;  %v37_v5 = vld [vmem:[%s1834_s1 + $0xc0] sm:$0xff]  ;;  %v38_v6 = vld [vmem:[%s1834_s1 + $0xc8] sm:$0xff] }
   0x7   :  { %1127 = vmatpush3.bf16.msra.mxu0 %v1365_v20  ;;  %v109_v30 = vand.u32 4294901760, %v34_v19  ;;  %v1387_v31 = vsub.f32 %v29_v0, %v94_v3  ;;  %v1389_v32 = vsub.f32 %v30_v1, %v97_v4  ;;  %v58_v33 = vand.u32 4294901760, %v17_v23  ;;  %v21_v11 = vld [vmem:[%s1834_s1 + $0x40] sm:$0xff] }
   0x8   :  { %1129 = vmatprep.subr.bf16.mxu0 %v1369_v22  ;;  %v61_v34 = vand.u32 4294901760, %v18_v24  ;;  %v1853_v35 = vand.u32 4294901760, %v1357_v15  ;;  %v1852_v36 = vand.u32 4294901760, %v1367_v21  ;;  %v1397_v38 = vsub.f32 %v16_v13, %v55_v17 }
   0x9   :  { %v1399_v39 = vpack.c.bf16 %v109_v30, %v106_v29  ;;  %v1401_v40 = vsub.f32 %v33_v18, %v106_v29  ;;  %v1858_v41 = vand.u32 4294901760, %v1387_v31  ;;  %v1407_v43 = vsub.f32 %v34_v19, %v109_v30  ;;  %v22_v29 = vld [vmem:[%s1834_s1 + $0x48] sm:$0xff] }
   0xa   :  { %v1855_v44 = vand.u32 4294901760, %v1389_v32  ;;  %v1410_v45 = vpack.c.bf16 %v61_v34, %v58_v33  ;;  %v1412_v46 = vsub.f32 %v17_v23, %v58_v33  ;;  %v161_v48 = vsub.f32 %v1357_v15, %v1853_v35 }
   0xb   :  { %1131 = vmatpush3.bf16.msra.mxu0 %v1382_v27  ;;  %v273_v47 = vsub.f32 %v1387_v31, %v1858_v41  ;;  %v168_v49 = vsub.f32 %v1367_v21, %v1852_v36  ;;  %v112_v50 = vand.u32 4294901760, %v35_v37  ;;  %v115_v52 = vand.u32 4294901760, %v36_v42 }
   0xc   :  { %1133 = vmatprep.subr.bf16.mxu0 %v1399_v39  ;;  %v280_v51 = vsub.f32 %v1389_v32, %v1855_v44  ;;  %v1850_v53 = vand.u32 4294901760, %v1378_v25  ;;  %v1849_v54 = vand.u32 4294901760, %v1380_v26  ;;  %v1436_v58 = vsub.f32 %v18_v24, %v61_v34 }
   0xd   :  { %v274_v57 = vand.u32 4294901760, %v273_v47  ;;  %v162_v59 = vand.u32 4294901760, %v161_v48  ;;  %v169_v60 = vand.u32 4294901760, %v168_v49  ;;  %v1438_v62 = vpack.c.bf16 %v115_v52, %v112_v50 }
   0xe   :  { %v281_v61 = vand.u32 4294901760, %v280_v51  ;;  %v1440_v63 = vsub.f32 %v35_v37, %v112_v50  ;;  %v287_v0 = vsub.f32 %v1378_v25, %v1850_v53  ;;  %v294_v2 = vsub.f32 %v1380_v26, %v1849_v54 }
   0xf   :  { %1135 = vmatpush3.bf16.msra.mxu0 %v1410_v45  ;;  %v1158_v1 = vpack.c.bf16 %v169_v60, %v162_v59  ;;  %v64_v3 = vand.u32 4294901760, %v19_v55  ;;  %v67_v4 = vand.u32 4294901760, %v20_v56  ;;  %v1848_v9 = vand.u32 4294901760, %v1384_v28 }
  0x10   :  { %v1156_v7 = vpack.c.bf16 %v281_v61, %v274_v57  ;;  %1137 = vmatprep.subr.bf16.mxu0 %v1438_v62  ;;  %v288_v8 = vand.u32 4294901760, %v287_v0  ;;  %v1845_v10 = vand.u32 4294901760, %v1397_v38  ;;  %v1461_v12 = vsub.f32 %v36_v42, %v115_v52  ;;  %v40_v57 = vld [vmem:[%s1834_s1 + $0xd8] sm:$0xff] }
  0x11   :  { %v295_v13 = vand.u32 4294901760, %v294_v2  ;;  %v1463_v16 = vpack.c.bf16 %v67_v4, %v64_v3  ;;  %v1465_v17 = vsub.f32 %v19_v55, %v64_v3  ;;  %v175_v18 = vsub.f32 %v1384_v28, %v1848_v9 }
  0x12   :  { %1157 = vmatprep.subr.bf16.mxu1 %v1156_v7  ;;  %v182_v19 = vsub.f32 %v1397_v38, %v1845_v10  ;;  %v118_v23 = vand.u32 4294901760, %v37_v5  ;;  %v121_v24 = vand.u32 4294901760, %v38_v6  ;;  %v1843_v33 = vand.u32 4294901760, %v1401_v40 }
  0x13   :  { %1159 = vmatpush3.bf16.msra.mxu1 %v1158_v1  ;;  %v1160_v30 = vpack.c.bf16 %v295_v13, %v288_v8  ;;  %1139 = vmatpush3.bf16.msra.mxu0 %v1463_v16  ;;  %v1842_v34 = vand.u32 4294901760, %v1407_v43  ;;  %v70_v37 = vand.u32 4294901760, %v21_v11  ;;  %v1479_v42 = vsub.f32 %v20_v56, %v67_v4  ;;  %v39_v56 = vld [vmem:[%s1834_s1 + $0xd0] sm:$0xff] }
  0x14   :  { %v176_v47 = vand.u32 4294901760, %v175_v18  ;;  %v183_v48 = vand.u32 4294901760, %v182_v19  ;;  %v1481_v49 = vpack.c.bf16 %v121_v24, %v118_v23  ;;  %v1483_v50 = vsub.f32 %v37_v5, %v118_v23  ;;  %v23_v1 = vld [vmem:[%s1834_s1 + $0x50] sm:$0xff]  ;;  %v24_v18 = vld [vmem:[%s1834_s1 + $0x58] sm:$0xff] }
  0x15   :  { %1161 = vmatprep.subr.bf16.mxu1 %v1160_v30  ;;  %v301_v51 = vsub.f32 %v1401_v40, %v1843_v33  ;;  %v308_v52 = vsub.f32 %v1407_v43, %v1842_v34  ;;  %v73_v55 = vand.u32 4294901760, %v22_v29  ;;  %v1498_v60 = vsub.f32 %v38_v6, %v121_v24 }
  0x16   :  { %v1162_v59 = vpack.c.bf16 %v183_v48, %v176_v47  ;;  %1141 = vmatprep.subr.bf16.mxu0 %v1481_v49  ;;  %v1840_v61 = vand.u32 4294901760, %v1412_v46  ;;  %v1839_v0 = vand.u32 4294901760, %v1436_v58  ;;  %v1507_v5 = vsub.f32 %v21_v11, %v70_v37 }
  0x17   :  { %v302_v2 = vand.u32 4294901760, %v301_v51  ;;  %v309_v3 = vand.u32 4294901760, %v308_v52  ;;  %v1505_v4 = vpack.c.bf16 %v73_v55, %v70_v37  ;;  %v124_v8 = vand.u32 4294901760, %v39_v56 }
  0x18   :  { %1163 = vmatpush3.bf16.msra.mxu1 %v1162_v59  ;;  %v189_v6 = vsub.f32 %v1412_v46, %v1840_v61  ;;  %v196_v7 = vsub.f32 %v1436_v58, %v1839_v0  ;;  %v127_v13 = vand.u32 4294901760, %v40_v57  ;;  %v1838_v11 = vand.u32 4294901760, %v1440_v63 }
  0x19   :  { %v1164_v19 = vpack.c.bf16 %v309_v3, %v302_v2  ;;  %1143 = vmatpush3.bf16.msra.mxu0 %v1505_v4  ;;  %v1837_v23 = vand.u32 4294901760, %v1461_v12  ;;  %v76_v24 = vand.u32 4294901760, %v23_v1  ;;  %v1521_v30 = vsub.f32 %v22_v29, %v73_v55  ;;  %v41_v29 = vld [vmem:[%s1834_s1 + $0xe0] sm:$0xff]  ;;  %v42_v55 = vld [vmem:[%s1834_s1 + $0xe8] sm:$0xff] }
  0x1a   :  { %v190_v37 = vand.u32 4294901760, %v189_v6  ;;  %v197_v47 = vand.u32 4294901760, %v196_v7  ;;  %v1523_v48 = vpack.c.bf16 %v127_v13, %v124_v8  ;;  %v1525_v51 = vsub.f32 %v39_v56, %v124_v8  ;;  %v25_v8 = vld [vmem:[%s1834_s1 + $0x60] sm:$0xff] }
  0x1b   :  { %1165 = vmatprep.subr.bf16.mxu1 %v1164_v19  ;;  %v315_v52 = vsub.f32 %v1440_v63, %v1838_v11  ;;  %v322_v59 = vsub.f32 %v1461_v12, %v1837_v23  ;;  %v79_v2 = vand.u32 4294901760, %v24_v18  ;;  %v1540_v56 = vsub.f32 %v40_v57, %v127_v13 }
  0x1c   :  { %v1166_v3 = vpack.c.bf16 %v197_v47, %v190_v37  ;;  %1145 = vmatprep.subr.bf16.mxu0 %v1523_v48  ;;  %v1841_v6 = vand.u32 4294901760, %v1465_v17  ;;  %v1844_v7 = vand.u32 4294901760, %v1479_v42  ;;  %v1549_v0 = vsub.f32 %v23_v1, %v76_v24 }
  0x1d   :  { %v316_v19 = vand.u32 4294901760, %v315_v52  ;;  %v323_v23 = vand.u32 4294901760, %v322_v59  ;;  %v1547_v11 = vpack.c.bf16 %v79_v2, %v76_v24  ;;  %v130_v37 = vand.u32 4294901760, %v41_v29  ;;  %v26_v52 = vld [vmem:[%s1834_s1 + $0x68] sm:$0xff] }
  0x1e   :  { %1167 = vmatpush3.bf16.msra.mxu1 %v1166_v3  ;;  %v203_v57 = vsub.f32 %v1465_v17, %v1841_v6  ;;  %v210_v13 = vsub.f32 %v1479_v42, %v1844_v7  ;;  %v133_v47 = vand.u32 4294901760, %v42_v55  ;;  %v1847_v1 = vand.u32 4294901760, %v1483_v50 }
  0x1f   :  { %v1168_v59 = vpack.c.bf16 %v323_v23, %v316_v19  ;;  %1147 = vmatpush3.bf16.msra.mxu0 %v1547_v11  ;;  %v1846_v24 = vand.u32 4294901760, %v1498_v60  ;;  %v82_v3 = vand.u32 4294901760, %v25_v8  ;;  %v1563_v61 = vsub.f32 %v24_v18, %v79_v2  ;;  %v43_v18 = vld [vmem:[%s1834_s1 + $0xf0] sm:$0xff]  ;;  %v44_v2 = vld [vmem:[%s1834_s1 + $0xf8] sm:$0xff] }
  0x20   :  { %v204_v6 = vand.u32 4294901760, %v203_v57  ;;  %v211_v34 = vand.u32 4294901760, %v210_v13  ;;  %v1565_v33 = vpack.c.bf16 %v133_v47, %v130_v37  ;;  %v1567_v7 = vsub.f32 %v41_v29, %v130_v37 }
  0x21   :  { %1169 = vmatprep.subr.bf16.mxu1 %v1168_v59  ;;  %v329_v23 = vsub.f32 %v1483_v50, %v1847_v1  ;;  %v336_v19 = vsub.f32 %v1498_v60, %v1846_v24  ;;  %v85_v10 = vand.u32 4294901760, %v26_v52  ;;  %v1582_v29 = vsub.f32 %v42_v55, %v133_v47  ;;  %v27_v59 = vld [vmem:[%s1834_s1 + $0x70] sm:$0xff] }
  0x22   :  { %v1170_v57 = vpack.c.bf16 %v211_v34, %v204_v6  ;;  %1149 = vmatprep.subr.bf16.mxu0 %v1565_v33  ;;  %v1851_v13 = vand.u32 4294901760, %v1507_v5  ;;  %v1854_v37 = vand.u32 4294901760, %v1521_v30  ;;  %v1591_v54 = vsub.f32 %v25_v8, %v82_v3 }
  0x23   :  { %v330_v24 = vand.u32 4294901760, %v329_v23  ;;  %v337_v1 = vand.u32 4294901760, %v336_v19  ;;  %v1589_v9 = vpack.c.bf16 %v85_v10, %v82_v3  ;;  %v136_v6 = vand.u32 4294901760, %v43_v18  ;;  %v28_v23 = vld [vmem:[%s1834_s1 + $0x78] sm:$0xff] }
  0x24   :  { %1171 = vmatpush3.bf16.msra.mxu1 %v1170_v57  ;;  %v217_v34 = vsub.f32 %v1507_v5, %v1851_v13  ;;  %v224_v55 = vsub.f32 %v1521_v30, %v1854_v37  ;;  %v139_v47 = vand.u32 4294901760, %v44_v2  ;;  %v1857_v8 = vand.u32 4294901760, %v1525_v51 }
  0x25   :  { %1881 = vst [vmem:[#allocation2_spill] sm:$0xff] %v1589_v9  ;;  %v1172_v19 = vpack.c.bf16 %v337_v1, %v330_v24  ;;  %1151 = vmatpush3.bf16.msra.mxu0 %v1589_v9  ;;  %v1856_v3 = vand.u32 4294901760, %v1540_v56  ;;  %v88_v57 = vand.u32 4294901760, %v27_v59  ;;  %v1605_v53 = vsub.f32 %v26_v52, %v85_v10  ;;  %v11_v10 = vld [vmem:[%s1835_s0] sm:$0xff]  ;;  %v12_v52 = vld [vmem:[%s1835_s0 + $0x8] sm:$0xff] }
  0x26   :  { %v218_v13 = vand.u32 4294901760, %v217_v34  ;;  %v225_v36 = vand.u32 4294901760, %v224_v55  ;;  %v1607_v35 = vpack.c.bf16 %v139_v47, %v136_v6  ;;  %v1609_v37 = vsub.f32 %v43_v18, %v136_v6 }
  0x27   :  { %1173 = vmatprep.subr.bf16.mxu1 %v1172_v19  ;;  %v343_v1 = vsub.f32 %v1525_v51, %v1857_v8  ;;  %v350_v24 = vsub.f32 %v1540_v56, %v1856_v3  ;;  %v91_v44 = vand.u32 4294901760, %v28_v23  ;;  %v1624_v18 = vsub.f32 %v44_v2, %v139_v47 }
  0x28   :  { %1882 = vst [vmem:[#allocation3_spill] sm:$0xff] %v1607_v35  ;;  %v1174_v34 = vpack.c.bf16 %v225_v36, %v218_v13  ;;  %1153 = vmatprep.subr.bf16.mxu0 %v1607_v35  ;;  %v1861_v55 = vand.u32 4294901760, %v1549_v0  ;;  %v1862_v6 = vand.u32 4294901760, %v1563_v61  ;;  %v1630_v41 = vsub.f32 %v27_v59, %v88_v57 }
  0x29   :  { %v344_v19 = vand.u32 4294901760, %v343_v1  ;;  %v351_v3 = vand.u32 4294901760, %v350_v24  ;;  %v1628_v8 = vpack.c.bf16 %v91_v44, %v88_v57  ;;  %v1638_v2 = vand.u32 4294901760, %v12_v52 }
  0x2a   :  { %1175 = vmatpush3.bf16.msra.mxu1 %v1174_v34  ;;  %v231_v9 = vsub.f32 %v1549_v0, %v1861_v55  ;;  %v238_v36 = vsub.f32 %v1563_v61, %v1862_v6  ;;  %v1640_v13 = vand.u32 4294901760, %v11_v10  ;;  %v1869_v1 = vand.u32 4294901760, %v1567_v7 }
  0x2b   :  { %1883 = vst [vmem:[#allocation4_spill] sm:$0xff] %v1628_v8  ;;  %1884 = vst [vmem:[#allocation5_spill] sm:$0xff] %v1638_v2  ;;  %v1176_v47 = vpack.c.bf16 %v351_v3, %v344_v19  ;;  %1155 = vmatpush3.bf16.msra.mxu0 %v1628_v8  ;;  %v1871_v59 = vand.u32 4294901760, %v1582_v29  ;;  %v1188_v57 = vpack.c.bf16 %v1389_v32, %v1387_v31  ;;  %382 = vmatprep.mubr.f32.mxu1 %v1638_v2 }
  0x2c   :  { %v232_v24 = vand.u32 4294901760, %v231_v9  ;;  %v239_v34 = vand.u32 4294901760, %v238_v36  ;;  %v1648_v55 = vsub.f32 %v12_v52, %v1638_v2  ;;  %v1651_v6 = vsub.f32 %v11_v10, %v1640_v13 }
  0x2d   :  { %1177 = vmatprep.subr.bf16.mxu1 %v1176_v47  ;;  %v357_v3 = vsub.f32 %v1567_v7, %v1869_v1  ;;  %v364_v19 = vsub.f32 %v1582_v29, %v1871_v59  ;;  %1189 = vmatprep.subr.bf16.mxu0 %v1188_v57  ;;  %v1870_v9 = vand.u32 4294901760, %v1591_v54  ;;  %v1872_v52 = vand.u32 4294901760, %v1605_v53 }
  0x2e   :  { %1885 = vst [vmem:[#allocation6_spill] sm:$0xff] %v1651_v6  ;;  %v1662_v36 = vsub.f32 %v28_v23, %v91_v44  ;;  %v1178_v10 = vpack.c.bf16 %v239_v34, %v232_v24  ;;  %v1873_v8 = vand.u32 4294901760, %v1648_v55  ;;  %v1874_v47 = vand.u32 4294901760, %v1651_v6 }
  0x2f   :  { %v358_v35 = vand.u32 4294901760, %v357_v3  ;;  %v365_v2 = vand.u32 4294901760, %v364_v19  ;;  %v245_v1 = vsub.f32 %v1591_v54, %v1870_v9  ;;  %v252_v57 = vsub.f32 %v1605_v53, %v1872_v52 }
  0x30   :  { %1179 = vmatpush3.bf16.msra.mxu1 %v1178_v10  ;;  %v144_v44 = vsub.f32 %v1648_v55, %v1873_v8  ;;  %v150_v23 = vsub.f32 %v1651_v6, %v1874_v47  ;;  %v1880_v24 = vand.u32 4294901760, %v1609_v37  ;;  %v1877_v34 = vand.u32 4294901760, %v1624_v18 }
  0x31   :  { %v1180_v3 = vpack.c.bf16 %v365_v2, %v358_v35  ;;  %v246_v19 = vand.u32 4294901760, %v245_v1  ;;  %v253_v9 = vand.u32 4294901760, %v252_v57  ;;  %v1190_v59 = vpack.c.bf16 %v1367_v21, %v1357_v15 }
  0x32   :  { %v145_v52 = vand.u32 4294901760, %v144_v44  ;;  %v151_v10 = vand.u32 4294901760, %v150_v23  ;;  %v371_v8 = vsub.f32 %v1609_v37, %v1880_v24  ;;  %v378_v47 = vsub.f32 %v1624_v18, %v1877_v34 }
  0x33   :  { %1181 = vmatprep.subr.bf16.mxu1 %v1180_v3  ;;  %v1182_v6 = vpack.c.bf16 %v253_v9, %v246_v19  ;;  %v1192_v35 = vpack.c.bf16 %v1380_v26, %v1378_v25  ;;  %v1879_v2 = vand.u32 4294901760, %v1630_v41  ;;  %v1878_v1 = vand.u32 4294901760, %v1662_v36 }
  0x34   :  { %146 = vmatprep.mubr.f32.mxu0 %v145_v52  ;;  %v372_v57 = vand.u32 4294901760, %v371_v8  ;;  %v379_v44 = vand.u32 4294901760, %v378_v47  ;;  %v1194_v19 = vpack.c.bf16 %v1397_v38, %v1384_v28  ;;  %v1196_v8 = vpack.c.bf16 %v1407_v43, %v1401_v40 }
  0x35   :  { %152 = vmatmul.mubr.f32.vlgmr.msra.gmra.mrb[0].mxu0 %v151_v10  ;;  %1183 = vmatpush3.bf16.msra.mxu1 %v1182_v6  ;;  %v259_v23 = vsub.f32 %v1630_v41, %v1879_v2  ;;  %v266_v9 = vsub.f32 %v1662_v36, %v1878_v1  ;;  %v1198_v6 = vpack.c.bf16 %v1436_v58, %v1412_v46  ;;  %v1886_v10 = vand.u32 4294901760, %v1387_v31 }
  0x36   :  { %1191 = vmatpush3.bf16.msra.mxu0 %v1190_v59  ;;  %v1184_v3 = vpack.c.bf16 %v379_v44, %v372_v57  ;;  %519 = vmatprep.mubr.f32.mxu0 %v1648_v55  ;;  %v1200_v47 = vpack.c.bf16 %v1461_v12, %v1440_v63  ;;  %v1887_v57 = vand.u32 4294901760, %v1389_v32  ;;  %v1888_v44 = vand.u32 4294901760, %v1357_v15 }
  0x37   :  { %1193 = vmatprep.subr.bf16.mxu0 %v1192_v35  ;;  %v260_v34 = vand.u32 4294901760, %v259_v23  ;;  %v267_v52 = vand.u32 4294901760, %v266_v9  ;;  %v1889_v23 = vand.u32 4294901760, %v1367_v21  ;;  %v1890_v1 = vand.u32 4294901760, %v1378_v25 }
  0x38   :  { %1185 = vmatprep.subr.bf16.mxu1 %v1184_v3  ;;  %v1252_v35 = vpack.c.bf16 %v1887_v57, %v1886_v10  ;;  %v1891_v3 = vand.u32 4294901760, %v1380_v26  ;;  %v1892_v24 = vand.u32 4294901760, %v1384_v28  ;;  %v1894_v31 = vand.u32 4294901760, %v1401_v40 }
  0x39   :  { %v1186_v59 = vpack.c.bf16 %v267_v52, %v260_v34  ;;  %v1254_v9 = vpack.c.bf16 %v1889_v23, %v1888_v44  ;;  %v1893_v34 = vand.u32 4294901760, %v1397_v38  ;;  %v1895_v32 = vand.u32 4294901760, %v1407_v43  ;;  %v1910_v23 = vld [vmem:[#allocation3_spill] sm:$0xff] }
  0x3a   :  { %v1256_v2 = vpack.c.bf16 %v1891_v3, %v1890_v1  ;;  %1195 = vmatpush3.bf16.msra.mxu0 %v1194_v19  ;;  %v1896_v15 = vand.u32 4294901760, %v1412_v46  ;;  %v1897_v21 = vand.u32 4294901760, %v1436_v58  ;;  %v1898_v25 = vand.u32 4294901760, %v1440_v63  ;;  %v1911_v3 = vld [vmem:[#allocation4_spill] sm:$0xff] }
  0x3b   :  { %v1258_v52 = vpack.c.bf16 %v1893_v34, %v1892_v24  ;;  %v1260_v10 = vpack.c.bf16 %v1895_v32, %v1894_v31  ;;  %v1899_v26 = vand.u32 4294901760, %v1461_v12  ;;  %1187 = vmatpush3.bf16.msra.mxu1 %v1186_v59  ;;  %1197 = vmatprep.subr.bf16.mxu0 %v1196_v8  ;;  %v1900_v28 = vand.u32 4294901760, %v1465_v17 }
  0x3c   :  { %v1262_v57 = vpack.c.bf16 %v1897_v21, %v1896_v15  ;;  %v1901_v38 = vand.u32 4294901760, %v1479_v42  ;;  %v1902_v43 = vand.u32 4294901760, %v1483_v50  ;;  %v1903_v24 = vand.u32 4294901760, %v1498_v60  ;;  %1221 = vmatprep.subr.bf16.mxu1 %v1355_v14 }
  0x3d   :  { %v1264_v1 = vpack.c.bf16 %v1899_v26, %v1898_v25  ;;  %v1904_v58 = vand.u32 4294901760, %v1507_v5  ;;  %v1905_v19 = vand.u32 4294901760, %v1521_v30  ;;  %v1202_v12 = vpack.c.bf16 %v1479_v42, %v1465_v17 }
  0x3e   :  { %v1266_v40 = vpack.c.bf16 %v1901_v38, %v1900_v28  ;;  %v1268_v46 = vpack.c.bf16 %v1903_v24, %v1902_v43  ;;  %384 = vmatmul.mubr.f32.vlgmr.msra.gmra.mrb[0].mxu1 %v1640_v13  ;;  %1199 = vmatpush3.bf16.msra.mxu0 %v1198_v6  ;;  %v1204_v8 = vpack.c.bf16 %v1498_v60, %v1483_v50  ;;  %v1906_v59 = vand.u32 4294901760, %v1648_v55  ;;  %v1907_v55 = vld [vmem:[#allocation6_spill] sm:$0xff]  ;;  %v1908_v6 = vld [vmem:[#allocation5_spill] sm:$0xff] }
  0x3f   :  { %v1270_v63 = vpack.c.bf16 %v1905_v19, %v1904_v58  ;;  %1223 = vmatpush3.bf16.msra.mxu1 %v1365_v20  ;;  %1201 = vmatprep.subr.bf16.mxu0 %v1200_v47  ;;  %v1206_v44 = vpack.c.bf16 %v1521_v30, %v1507_v5  ;;  %v1208_v17 = vpack.c.bf16 %v1540_v56, %v1525_v51  ;;  %v1909_v47 = vld [vmem:[#allocation2_spill] sm:$0xff]  ;;  %v1915_v34 = vand.u32 4294901760, %v1549_v0 }
  0x40   :  { %1225 = vmatprep.subr.bf16.mxu1 %v1369_v22  ;;  %626 = vmatprep.mubr.f32.mxu1 %v1906_v59  ;;  %v1210_v42 = vpack.c.bf16 %v1563_v61, %v1549_v0  ;;  %v1212_v50 = vpack.c.bf16 %v1582_v29, %v1567_v7  ;;  %v1214_v60 = vpack.c.bf16 %v1605_v53, %v1591_v54 }
  0x41   :  { %v1216_v5 = vpack.c.bf16 %v1624_v18, %v1609_v37  ;;  %v1218_v30 = vpack.c.bf16 %v1662_v36, %v1630_v41 }
  0x42   :  { %1203 = vmatpush3.bf16.msra.mxu0 %v1202_v12 }
  0x43   :  { %1227 = vmatpush3.bf16.msra.mxu1 %v1382_v27  ;;  %1205 = vmatprep.subr.bf16.mxu0 %v1204_v8 }
  0x44   :  { %1229 = vmatprep.subr.bf16.mxu1 %v1399_v39 }
  0x46   :  { %1207 = vmatpush3.bf16.msra.mxu0 %v1206_v44 }
  0x47   :  { %1231 = vmatpush3.bf16.msra.mxu1 %v1410_v45  ;;  %1209 = vmatprep.subr.bf16.mxu0 %v1208_v17 }
  0x48   :  { %1233 = vmatprep.subr.bf16.mxu1 %v1438_v62 }
  0x4a   :  { %1211 = vmatpush3.bf16.msra.mxu0 %v1210_v42 }
  0x4b   :  { %1235 = vmatpush3.bf16.msra.mxu1 %v1463_v16  ;;  %1213 = vmatprep.subr.bf16.mxu0 %v1212_v50 }
  0x4c   :  { %1237 = vmatprep.subr.bf16.mxu1 %v1481_v49 }
  0x4e   :  { %1215 = vmatpush3.bf16.msra.mxu0 %v1214_v60 }
  0x4f   :  { %1239 = vmatpush3.bf16.msra.mxu1 %v1505_v4  ;;  %1217 = vmatprep.subr.bf16.mxu0 %v1216_v5 }
  0x50   :  { %1241 = vmatprep.subr.bf16.mxu1 %v1523_v48 }
  0x52   :  { %1219 = vmatpush3.bf16.msra.mxu0 %v1218_v30 }
  0x53   :  { %1243 = vmatpush3.bf16.msra.mxu1 %v1547_v11  ;;  %1253 = vmatprep.subr.bf16.mxu0 %v1252_v35  ;;  %v1912_v35 = vand.u32 4294901760, %v1907_v55 }
  0x54   :  { %1245 = vmatprep.subr.bf16.mxu1 %v1565_v33 }
  0x55   :  { %522 = vmatmul.mubr.f32.vlgmr.msra.gmra.mrb[2].mxu0 %v1907_v55 }
  0x56   :  { %1255 = vmatpush3.bf16.msra.mxu0 %v1254_v9  ;;  %796 = vmatprep.mubr.f32.mxu0 %v1908_v6  ;;  %v1914_v9 = vand.u32 4294901760, %v1540_v56 }
  0x57   :  { %1247 = vmatpush3.bf16.msra.mxu1 %v1909_v47  ;;  %1257 = vmatprep.subr.bf16.mxu0 %v1256_v2  ;;  %v1913_v2 = vand.u32 4294901760, %v1525_v51  ;;  %v1919_v51 = vand.u32 4294901760, %v1591_v54 }
  0x58   :  { %1249 = vmatprep.subr.bf16.mxu1 %v1910_v23 }
  0x5a   :  { %1259 = vmatpush3.bf16.msra.mxu0 %v1258_v52 }
  0x5b   :  { %1251 = vmatpush3.bf16.msra.mxu1 %v1911_v3  ;;  %1261 = vmatprep.subr.bf16.mxu0 %v1260_v10 }
  0x5c   :  { %1285 = vmatprep.subr.bf16.mxu1 %v1355_v14  ;;  %v1272_v14 = vpack.c.bf16 %v1914_v9, %v1913_v2 }
  0x5e   :  { %630 = vmatmul.mubr.f32.vlgmr.msra.gmra.mrb[2].mxu1 %v1912_v35  ;;  %1263 = vmatpush3.bf16.msra.mxu0 %v1262_v57 }
  0x5f   :  { %1287 = vmatpush3.bf16.msra.mxu1 %v1365_v20  ;;  %1265 = vmatprep.subr.bf16.mxu0 %v1264_v1  ;;  %v1916_v20 = vand.u32 4294901760, %v1563_v61  ;;  %v1921_v61 = vand.u32 4294901760, %v1609_v37 }
  0x60   :  { %1289 = vmatprep.subr.bf16.mxu1 %v1369_v22  ;;  %900 = vmatprep.mubr.f32.mxu1 %v1908_v6  ;;  %v1917_v22 = vand.u32 4294901760, %v1567_v7  ;;  %v1923_v7 = vand.u32 4294901760, %v1630_v41 }
  0x61   :  { %v1274_v52 = vpack.c.bf16 %v1916_v20, %v1915_v34 }
  0x62   :  { %1267 = vmatpush3.bf16.msra.mxu0 %v1266_v40 }
  0x63   :  { %1291 = vmatpush3.bf16.msra.mxu1 %v1382_v27  ;;  %1269 = vmatprep.subr.bf16.mxu0 %v1268_v46  ;;  %v1918_v27 = vand.u32 4294901760, %v1582_v29 }
  0x64   :  { %1293 = vmatprep.subr.bf16.mxu1 %v1399_v39  ;;  %v1920_v39 = vand.u32 4294901760, %v1605_v53 }
  0x65   :  { %v1276_v31 = vpack.c.bf16 %v1918_v27, %v1917_v22 }
  0x66   :  { %1271 = vmatpush3.bf16.msra.mxu0 %v1270_v63  ;;  %v1278_v56 = vpack.c.bf16 %v1920_v39, %v1919_v51 }
  0x67   :  { %1295 = vmatpush3.bf16.msra.mxu1 %v1410_v45  ;;  %1273 = vmatprep.subr.bf16.mxu0 %v1272_v14  ;;  %v1922_v45 = vand.u32 4294901760, %v1624_v18 }
  0x68   :  { %1297 = vmatprep.subr.bf16.mxu1 %v1438_v62  ;;  %v1924_v62 = vand.u32 4294901760, %v1662_v36 }
  0x69   :  { %v1280_v0 = vpack.c.bf16 %v1922_v45, %v1921_v61 }
  0x6a   :  { %1275 = vmatpush3.bf16.msra.mxu0 %v1274_v52  ;;  %v1282_v29 = vpack.c.bf16 %v1924_v62, %v1923_v7 }
  0x6b   :  { %1299 = vmatpush3.bf16.msra.mxu1 %v1463_v16  ;;  %1277 = vmatprep.subr.bf16.mxu0 %v1276_v31 }
  0x6c   :  { %1301 = vmatprep.subr.bf16.mxu1 %v1481_v49 }
  0x6e   :  { %1279 = vmatpush3.bf16.msra.mxu0 %v1278_v56 }
  0x6f   :  { %1303 = vmatpush3.bf16.msra.mxu1 %v1505_v4  ;;  %1281 = vmatprep.subr.bf16.mxu0 %v1280_v0 }
  0x70   :  { %1305 = vmatprep.subr.bf16.mxu1 %v1523_v48 }
  0x72   :  { %1283 = vmatpush3.bf16.msra.mxu0 %v1282_v29 }
  0x73   :  { %1307 = vmatpush3.bf16.msra.mxu1 %v1547_v11 }
  0x74   :  { %1309 = vmatprep.subr.bf16.mxu1 %v1565_v33 }
  0x75   :  { %798 = vmatmul.mubr.f32.vlgmr.msra.gmra.mrb[4].mxu0 %v1640_v13 }
  0x77   :  { %1311 = vmatpush3.bf16.msra.mxu1 %v1909_v47 }
  0x78   :  { %1313 = vmatprep.subr.bf16.mxu1 %v1910_v23 }
  0x7b   :  { %1315 = vmatpush3.bf16.msra.mxu1 %v1911_v3 }
  0x7e   :  { %902 = vmatmul.mubr.f32.vlgmr.msra.gmra.mrb[4].mxu1 %v1640_v13 }
 0x108   :  { %v946_v41 = vpop.f32.mrb[0].mxu0 }
 0x109   :  { %v947_v53 = vpop.f32.mrb[1].mxu0 }
 0x10a   :  { %v948_v54 = vadd.f32 %v947_v53, %v946_v41 }
 0x111   :  { %v981_v16 = vpop.f32.mrb[0].mxu1 }
 0x112   :  { %v982_v49 = vpop.f32.mrb[1].mxu1 }
 0x113   :  { %v983_v4 = vadd.f32 %v982_v49, %v981_v16 }
 0x115   :  { %v386_v48 = vadd.f32 %v983_v4, %v948_v54 }
 0x128   :  { %v1016_v11 = vpop.f32.mrb[2].mxu0 }
 0x129   :  { %v1017_v37 = vpop.f32.mrb[3].mxu0 }
 0x12a   :  { %v1018_v33 = vadd.f32 %v1017_v37, %v1016_v11 }
 0x12c   :  { %v524_v18 = vadd.f32 %v1018_v33, %v386_v48 }
 0x131   :  { %v1051_v36 = vpop.f32.mrb[2].mxu1 }
 0x132   :  { %v1052_v32 = vpop.f32.mrb[3].mxu1 }
 0x133   :  { %v1053_v10 = vadd.f32 %v1052_v32, %v1051_v36 }
 0x135   :  { %v632_v15 = vadd.f32 %v1053_v10, %v524_v18 }
 0x148   :  { %v1086_v21 = vpop.f32.mrb[4].mxu0 }
 0x149   :  { %v1087_v57 = vpop.f32.mrb[5].mxu0 }
 0x14a   :  { %v1088_v25 = vadd.f32 %v1087_v57, %v1086_v21 }
 0x14c   :  { %v800_v26 = vadd.f32 %v1088_v25, %v632_v15 }
 0x151   :  { %v1121_v13 = vpop.f32.mrb[4].mxu1 }
 0x152   :  { %v1122_v1 = vpop.f32.mrb[5].mxu1 }
 0x153   :  { %v1123_v28 = vadd.f32 %v1122_v1, %v1121_v13 }
 0x155   :  { %v904_v38 = vadd.f32 %v1123_v28, %v800_v26 }
 0x157   :  { %v907_v40 = vmul.f32 0.0625, %v904_v38 }
 0x159   :  { %909 = vst.msk [vmem:[%s1836_s2] sm:$0xff] %vm908_vm0, %v907_v40 }

// kernel: _pool_fused.1
= control target key start
LH: loop header
LB: loop body
LE: loop exit
PB: predicated region body
PF: predicated region fallthrough
CT: control target
= control target key end

     0   :  { %vm908_vm0 = vcmask 130048   ;;  %s1834_s1 = inlined_call_operand.vmem [shape: f32[256,16], index: 1, kind: input, shape index: {}]   ;;  %s1835_s0 = inlined_call_operand.vmem [shape: f32[8,256], index: 0, kind: input, shape index: {}]   ;;  %s1836_s2 = inlined_call_operand.vmem [shape: f32[8,16], index: 2, kind: output, shape index: {}]  }
   0x1   :  { %v29_v0 = vld [vmem:[%s1834_s1 + $0x80] sm:$0xff]  ;;  %v30_v1 = vld [vmem:[%s1834_s1 + $0x88] sm:$0xff]  ;;  %v31_v7 = vld [vmem:[%s1834_s1 + $0x90] sm:$0xff] }
   0x2   :  { %v13_v2 = vld [vmem:[%s1834_s1] sm:$0xff]  ;;  %v94_v3 = vand.u32 4294901760, %v29_v0  ;;  %v97_v4 = vand.u32 4294901760, %v30_v1  ;;  %v14_v5 = vld [vmem:[%s1834_s1 + $0x8] sm:$0xff]  ;;  %v32_v8 = vld [vmem:[%s1834_s1 + $0x98] sm:$0xff]  ;;  %v100_v10 = vand.u32 4294901760, %v31_v7 }
   0x3   :  { %v46_v6 = vand.u32 4294901760, %v13_v2  ;;  %v49_v9 = vand.u32 4294901760, %v14_v5  ;;  %v103_v11 = vand.u32 4294901760, %v32_v8  ;;  %v15_v12 = vld [vmem:[%s1834_s1 + $0x10] sm:$0xff]  ;;  %v16_v13 = vld [vmem:[%s1834_s1 + $0x18] sm:$0xff]  ;;  %v33_v18 = vld [vmem:[%s1834_s1 + $0xa0] sm:$0xff] }
   0x4   :  { %v1355_v14 = vpack.c.bf16 %v97_v4, %v94_v3  ;;  %v52_v16 = vand.u32 4294901760, %v15_v12  ;;  %v55_v17 = vand.u32 4294901760, %v16_v13  ;;  %v34_v19 = vld [vmem:[%s1834_s1 + $0xa8] sm:$0xff]  ;;  %v17_v23 = vld [vmem:[%s1834_s1 + $0x20] sm:$0xff]  ;;  %v1378_v25 = vsub.f32 %v31_v7, %v100_v10  ;;  %v35_v37 = vld [vmem:[%s1834_s1 + $0xb0] sm:$0xff] }
   0x5   :  { %v1357_v15 = vsub.f32 %v13_v2, %v46_v6  ;;  %v1365_v20 = vpack.c.bf16 %v49_v9, %v46_v6  ;;  %v1367_v21 = vsub.f32 %v14_v5, %v49_v9  ;;  %v1369_v22 = vpack.c.bf16 %v103_v11, %v100_v10  ;;  %v18_v24 = vld [vmem:[%s1834_s1 + $0x28] sm:$0xff]  ;;  %v36_v42 = vld [vmem:[%s1834_s1 + $0xb8] sm:$0xff]  ;;  %v19_v55 = vld [vmem:[%s1834_s1 + $0x30] sm:$0xff] }
   0x6   :  { %1125 = vmatprep.subr.bf16.mxu0 %v1355_v14  ;;  %v1380_v26 = vsub.f32 %v32_v8, %v103_v11  ;;  %v1382_v27 = vpack.c.bf16 %v55_v17, %v52_v16  ;;  %v1384_v28 = vsub.f32 %v15_v12, %v52_v16  ;;  %v106_v29 = vand.u32 4294901760, %v33_v18  ;;  %v20_v56 = vld [vmem:[%s1834_s1 + $0x38] sm:$0xff]  ;;  %v37_v5 = vld [vmem:[%s1834_s1 + $0xc0] sm:$0xff]  ;;  %v38_v6 = vld [vmem:[%s1834_s1 + $0xc8] sm:$0xff] }
   0x7   :  { %1127 = vmatpush3.bf16.msra.mxu0 %v1365_v20  ;;  %v109_v30 = vand.u32 4294901760, %v34_v19  ;;  %v1387_v31 = vsub.f32 %v29_v0, %v94_v3  ;;  %v1389_v32 = vsub.f32 %v30_v1, %v97_v4  ;;  %v58_v33 = vand.u32 4294901760, %v17_v23  ;;  %v21_v11 = vld [vmem:[%s1834_s1 + $0x40] sm:$0xff] }
   0x8   :  { %1129 = vmatprep.subr.bf16.mxu0 %v1369_v22  ;;  %v61_v34 = vand.u32 4294901760, %v18_v24  ;;  %v1853_v35 = vand.u32 4294901760, %v1357_v15  ;;  %v1852_v36 = vand.u32 4294901760, %v1367_v21  ;;  %v1397_v38 = vsub.f32 %v16_v13, %v55_v17 }
   0x9   :  { %v1399_v39 = vpack.c.bf16 %v109_v30, %v106_v29  ;;  %v1401_v40 = vsub.f32 %v33_v18, %v106_v29  ;;  %v1858_v41 = vand.u32 4294901760, %v1387_v31  ;;  %v1407_v43 = vsub.f32 %v34_v19, %v109_v30  ;;  %v22_v29 = vld [vmem:[%s1834_s1 + $0x48] sm:$0xff] }
   0xa   :  { %v1855_v44 = vand.u32 4294901760, %v1389_v32  ;;  %v1410_v45 = vpack.c.bf16 %v61_v34, %v58_v33  ;;  %v1412_v46 = vsub.f32 %v17_v23, %v58_v33  ;;  %v161_v48 = vsub.f32 %v1357_v15, %v1853_v35 }
   0xb   :  { %1131 = vmatpush3.bf16.msra.mxu0 %v1382_v27  ;;  %v273_v47 = vsub.f32 %v1387_v31, %v1858_v41  ;;  %v168_v49 = vsub.f32 %v1367_v21, %v1852_v36  ;;  %v112_v50 = vand.u32 4294901760, %v35_v37  ;;  %v115_v52 = vand.u32 4294901760, %v36_v42 }
   0xc   :  { %1133 = vmatprep.subr.bf16.mxu0 %v1399_v39  ;;  %v280_v51 = vsub.f32 %v1389_v32, %v1855_v44  ;;  %v1850_v53 = vand.u32 4294901760, %v1378_v25  ;;  %v1849_v54 = vand.u32 4294901760, %v1380_v26  ;;  %v1436_v58 = vsub.f32 %v18_v24, %v61_v34 }
   0xd   :  { %v274_v57 = vand.u32 4294901760, %v273_v47  ;;  %v162_v59 = vand.u32 4294901760, %v161_v48  ;;  %v169_v60 = vand.u32 4294901760, %v168_v49  ;;  %v1438_v62 = vpack.c.bf16 %v115_v52, %v112_v50 }
   0xe   :  { %v281_v61 = vand.u32 4294901760, %v280_v51  ;;  %v1440_v63 = vsub.f32 %v35_v37, %v112_v50  ;;  %v287_v0 = vsub.f32 %v1378_v25, %v1850_v53  ;;  %v294_v2 = vsub.f32 %v1380_v26, %v1849_v54 }
   0xf   :  { %1135 = vmatpush3.bf16.msra.mxu0 %v1410_v45  ;;  %v1158_v1 = vpack.c.bf16 %v169_v60, %v162_v59  ;;  %v64_v3 = vand.u32 4294901760, %v19_v55  ;;  %v67_v4 = vand.u32 4294901760, %v20_v56  ;;  %v1848_v9 = vand.u32 4294901760, %v1384_v28 }
  0x10   :  { %v1156_v7 = vpack.c.bf16 %v281_v61, %v274_v57  ;;  %1137 = vmatprep.subr.bf16.mxu0 %v1438_v62  ;;  %v288_v8 = vand.u32 4294901760, %v287_v0  ;;  %v1845_v10 = vand.u32 4294901760, %v1397_v38  ;;  %v1461_v12 = vsub.f32 %v36_v42, %v115_v52  ;;  %v40_v57 = vld [vmem:[%s1834_s1 + $0xd8] sm:$0xff] }
  0x11   :  { %v295_v13 = vand.u32 4294901760, %v294_v2  ;;  %v1463_v16 = vpack.c.bf16 %v67_v4, %v64_v3  ;;  %v1465_v17 = vsub.f32 %v19_v55, %v64_v3  ;;  %v175_v18 = vsub.f32 %v1384_v28, %v1848_v9 }
  0x12   :  { %1157 = vmatprep.subr.bf16.mxu1 %v1156_v7  ;;  %v182_v19 = vsub.f32 %v1397_v38, %v1845_v10  ;;  %v118_v23 = vand.u32 4294901760, %v37_v5  ;;  %v121_v24 = vand.u32 4294901760, %v38_v6  ;;  %v1843_v33 = vand.u32 4294901760, %v1401_v40 }
  0x13   :  { %1159 = vmatpush3.bf16.msra.mxu1 %v1158_v1  ;;  %v1160_v30 = vpack.c.bf16 %v295_v13, %v288_v8  ;;  %1139 = vmatpush3.bf16.msra.mxu0 %v1463_v16  ;;  %v1842_v34 = vand.u32 4294901760, %v1407_v43  ;;  %v70_v37 = vand.u32 4294901760, %v21_v11  ;;  %v1479_v42 = vsub.f32 %v20_v56, %v67_v4  ;;  %v39_v56 = vld [vmem:[%s1834_s1 + $0xd0] sm:$0xff] }
  0x14   :  { %v176_v47 = vand.u32 4294901760, %v175_v18  ;;  %v183_v48 = vand.u32 4294901760, %v182_v19  ;;  %v1481_v49 = vpack.c.bf16 %v121_v24, %v118_v23  ;;  %v1483_v50 = vsub.f32 %v37_v5, %v118_v23  ;;  %v23_v1 = vld [vmem:[%s1834_s1 + $0x50] sm:$0xff]  ;;  %v24_v18 = vld [vmem:[%s1834_s1 + $0x58] sm:$0xff] }
  0x15   :  { %1161 = vmatprep.subr.bf16.mxu1 %v1160_v30  ;;  %v301_v51 = vsub.f32 %v1401_v40, %v1843_v33  ;;  %v308_v52 = vsub.f32 %v1407_v43, %v1842_v34  ;;  %v73_v55 = vand.u32 4294901760, %v22_v29  ;;  %v1498_v60 = vsub.f32 %v38_v6, %v121_v24 }
  0x16   :  { %v1162_v59 = vpack.c.bf16 %v183_v48, %v176_v47  ;;  %1141 = vmatprep.subr.bf16.mxu0 %v1481_v49  ;;  %v1840_v61 = vand.u32 4294901760, %v1412_v46  ;;  %v1839_v0 = vand.u32 4294901760, %v1436_v58  ;;  %v1507_v5 = vsub.f32 %v21_v11, %v70_v37 }
  0x17   :  { %v302_v2 = vand.u32 4294901760, %v301_v51  ;;  %v309_v3 = vand.u32 4294901760, %v308_v52  ;;  %v1505_v4 = vpack.c.bf16 %v73_v55, %v70_v37  ;;  %v124_v8 = vand.u32 4294901760, %v39_v56 }
  0x18   :  { %1163 = vmatpush3.bf16.msra.mxu1 %v1162_v59  ;;  %v189_v6 = vsub.f32 %v1412_v46, %v1840_v61  ;;  %v196_v7 = vsub.f32 %v1436_v58, %v1839_v0  ;;  %v127_v13 = vand.u32 4294901760, %v40_v57  ;;  %v1838_v11 = vand.u32 4294901760, %v1440_v63 }
  0x19   :  { %v1164_v19 = vpack.c.bf16 %v309_v3, %v302_v2  ;;  %1143 = vmatpush3.bf16.msra.mxu0 %v1505_v4  ;;  %v1837_v23 = vand.u32 4294901760, %v1461_v12  ;;  %v76_v24 = vand.u32 4294901760, %v23_v1  ;;  %v1521_v30 = vsub.f32 %v22_v29, %v73_v55  ;;  %v41_v29 = vld [vmem:[%s1834_s1 + $0xe0] sm:$0xff]  ;;  %v42_v55 = vld [vmem:[%s1834_s1 + $0xe8] sm:$0xff] }
  0x1a   :  { %v190_v37 = vand.u32 4294901760, %v189_v6  ;;  %v197_v47 = vand.u32 4294901760, %v196_v7  ;;  %v1523_v48 = vpack.c.bf16 %v127_v13, %v124_v8  ;;  %v1525_v51 = vsub.f32 %v39_v56, %v124_v8  ;;  %v25_v8 = vld [vmem:[%s1834_s1 + $0x60] sm:$0xff] }
  0x1b   :  { %1165 = vmatprep.subr.bf16.mxu1 %v1164_v19  ;;  %v315_v52 = vsub.f32 %v1440_v63, %v1838_v11  ;;  %v322_v59 = vsub.f32 %v1461_v12, %v1837_v23  ;;  %v79_v2 = vand.u32 4294901760, %v24_v18  ;;  %v1540_v56 = vsub.f32 %v40_v57, %v127_v13 }
  0x1c   :  { %v1166_v3 = vpack.c.bf16 %v197_v47, %v190_v37  ;;  %1145 = vmatprep.subr.bf16.mxu0 %v1523_v48  ;;  %v1841_v6 = vand.u32 4294901760, %v1465_v17  ;;  %v1844_v7 = vand.u32 4294901760, %v1479_v42  ;;  %v1549_v0 = vsub.f32 %v23_v1, %v76_v24 }
  0x1d   :  { %v316_v19 = vand.u32 4294901760, %v315_v52  ;;  %v323_v23 = vand.u32 4294901760, %v322_v59  ;;  %v1547_v11 = vpack.c.bf16 %v79_v2, %v76_v24  ;;  %v130_v37 = vand.u32 4294901760, %v41_v29  ;;  %v26_v52 = vld [vmem:[%s1834_s1 + $0x68] sm:$0xff] }
  0x1e   :  { %1167 = vmatpush3.bf16.msra.mxu1 %v1166_v3  ;;  %v203_v57 = vsub.f32 %v1465_v17, %v1841_v6  ;;  %v210_v13 = vsub.f32 %v1479_v42, %v1844_v7  ;;  %v133_v47 = vand.u32 4294901760, %v42_v55  ;;  %v1847_v1 = vand.u32 4294901760, %v1483_v50 }
  0x1f   :  { %v1168_v59 = vpack.c.bf16 %v323_v23, %v316_v19  ;;  %1147 = vmatpush3.bf16.msra.mxu0 %v1547_v11  ;;  %v1846_v24 = vand.u32 4294901760, %v1498_v60  ;;  %v82_v3 = vand.u32 4294901760, %v25_v8  ;;  %v1563_v61 = vsub.f32 %v24_v18, %v79_v2  ;;  %v43_v18 = vld [vmem:[%s1834_s1 + $0xf0] sm:$0xff]  ;;  %v44_v2 = vld [vmem:[%s1834_s1 + $0xf8] sm:$0xff] }
  0x20   :  { %v204_v6 = vand.u32 4294901760, %v203_v57  ;;  %v211_v34 = vand.u32 4294901760, %v210_v13  ;;  %v1565_v33 = vpack.c.bf16 %v133_v47, %v130_v37  ;;  %v1567_v7 = vsub.f32 %v41_v29, %v130_v37 }
  0x21   :  { %1169 = vmatprep.subr.bf16.mxu1 %v1168_v59  ;;  %v329_v23 = vsub.f32 %v1483_v50, %v1847_v1  ;;  %v336_v19 = vsub.f32 %v1498_v60, %v1846_v24  ;;  %v85_v10 = vand.u32 4294901760, %v26_v52  ;;  %v1582_v29 = vsub.f32 %v42_v55, %v133_v47  ;;  %v27_v59 = vld [vmem:[%s1834_s1 + $0x70] sm:$0xff] }
  0x22   :  { %v1170_v57 = vpack.c.bf16 %v211_v34, %v204_v6  ;;  %1149 = vmatprep.subr.bf16.mxu0 %v1565_v33  ;;  %v1851_v13 = vand.u32 4294901760, %v1507_v5  ;;  %v1854_v37 = vand.u32 4294901760, %v1521_v30  ;;  %v1591_v54 = vsub.f32 %v25_v8, %v82_v3 }
  0x23   :  { %v330_v24 = vand.u32 4294901760, %v329_v23  ;;  %v337_v1 = vand.u32 4294901760, %v336_v19  ;;  %v1589_v9 = vpack.c.bf16 %v85_v10, %v82_v3  ;;  %v136_v6 = vand.u32 4294901760, %v43_v18  ;;  %v28_v23 = vld [vmem:[%s1834_s1 + $0x78] sm:$0xff] }
  0x24   :  { %1171 = vmatpush3.bf16.msra.mxu1 %v1170_v57  ;;  %v217_v34 = vsub.f32 %v1507_v5, %v1851_v13  ;;  %v224_v55 = vsub.f32 %v1521_v30, %v1854_v37  ;;  %v139_v47 = vand.u32 4294901760, %v44_v2  ;;  %v1857_v8 = vand.u32 4294901760, %v1525_v51 }
  0x25   :  { %1881 = vst [vmem:[#allocation2_spill] sm:$0xff] %v1589_v9  ;;  %v1172_v19 = vpack.c.bf16 %v337_v1, %v330_v24  ;;  %1151 = vmatpush3.bf16.msra.mxu0 %v1589_v9  ;;  %v1856_v3 = vand.u32 4294901760, %v1540_v56  ;;  %v88_v57 = vand.u32 4294901760, %v27_v59  ;;  %v1605_v53 = vsub.f32 %v26_v52, %v85_v10  ;;  %v11_v10 = vld [vmem:[%s1835_s0] sm:$0xff]  ;;  %v12_v52 = vld [vmem:[%s1835_s0 + $0x8] sm:$0xff] }
  0x26   :  { %v218_v13 = vand.u32 4294901760, %v217_v34  ;;  %v225_v36 = vand.u32 4294901760, %v224_v55  ;;  %v1607_v35 = vpack.c.bf16 %v139_v47, %v136_v6  ;;  %v1609_v37 = vsub.f32 %v43_v18, %v136_v6 }
  0x27   :  { %1173 = vmatprep.subr.bf16.mxu1 %v1172_v19  ;;  %v343_v1 = vsub.f32 %v1525_v51, %v1857_v8  ;;  %v350_v24 = vsub.f32 %v1540_v56, %v1856_v3  ;;  %v91_v44 = vand.u32 4294901760, %v28_v23  ;;  %v1624_v18 = vsub.f32 %v44_v2, %v139_v47 }
  0x28   :  { %1882 = vst [vmem:[#allocation3_spill] sm:$0xff] %v1607_v35  ;;  %v1174_v34 = vpack.c.bf16 %v225_v36, %v218_v13  ;;  %1153 = vmatprep.subr.bf16.mxu0 %v1607_v35  ;;  %v1861_v55 = vand.u32 4294901760, %v1549_v0  ;;  %v1862_v6 = vand.u32 4294901760, %v1563_v61  ;;  %v1630_v41 = vsub.f32 %v27_v59, %v88_v57 }
  0x29   :  { %v344_v19 = vand.u32 4294901760, %v343_v1  ;;  %v351_v3 = vand.u32 4294901760, %v350_v24  ;;  %v1628_v8 = vpack.c.bf16 %v91_v44, %v88_v57  ;;  %v1638_v2 = vand.u32 4294901760, %v12_v52 }
  0x2a   :  { %1175 = vmatpush3.bf16.msra.mxu1 %v1174_v34  ;;  %v231_v9 = vsub.f32 %v1549_v0, %v1861_v55  ;;  %v238_v36 = vsub.f32 %v1563_v61, %v1862_v6  ;;  %v1640_v13 = vand.u32 4294901760, %v11_v10  ;;  %v1869_v1 = vand.u32 4294901760, %v1567_v7 }
  0x2b   :  { %1883 = vst [vmem:[#allocation4_spill] sm:$0xff] %v1628_v8  ;;  %1884 = vst [vmem:[#allocation5_spill] sm:$0xff] %v1638_v2  ;;  %v1176_v47 = vpack.c.bf16 %v351_v3, %v344_v19  ;;  %1155 = vmatpush3.bf16.msra.mxu0 %v1628_v8  ;;  %v1871_v59 = vand.u32 4294901760, %v1582_v29  ;;  %v1188_v57 = vpack.c.bf16 %v1389_v32, %v1387_v31  ;;  %382 = vmatprep.mubr.f32.mxu1 %v1638_v2 }
  0x2c   :  { %v232_v24 = vand.u32 4294901760, %v231_v9  ;;  %v239_v34 = vand.u32 4294901760, %v238_v36  ;;  %v1648_v55 = vsub.f32 %v12_v52, %v1638_v2  ;;  %v1651_v6 = vsub.f32 %v11_v10, %v1640_v13 }
  0x2d   :  { %1177 = vmatprep.subr.bf16.mxu1 %v1176_v47  ;;  %v357_v3 = vsub.f32 %v1567_v7, %v1869_v1  ;;  %v364_v19 = vsub.f32 %v1582_v29, %v1871_v59  ;;  %1189 = vmatprep.subr.bf16.mxu0 %v1188_v57  ;;  %v1870_v9 = vand.u32 4294901760, %v1591_v54  ;;  %v1872_v52 = vand.u32 4294901760, %v1605_v53 }
  0x2e   :  { %1885 = vst [vmem:[#allocation6_spill] sm:$0xff] %v1651_v6  ;;  %v1662_v36 = vsub.f32 %v28_v23, %v91_v44  ;;  %v1178_v10 = vpack.c.bf16 %v239_v34, %v232_v24  ;;  %v1873_v8 = vand.u32 4294901760, %v1648_v55  ;;  %v1874_v47 = vand.u32 4294901760, %v1651_v6 }
  0x2f   :  { %v358_v35 = vand.u32 4294901760, %v357_v3  ;;  %v365_v2 = vand.u32 4294901760, %v364_v19  ;;  %v245_v1 = vsub.f32 %v1591_v54, %v1870_v9  ;;  %v252_v57 = vsub.f32 %v1605_v53, %v1872_v52 }
  0x30   :  { %1179 = vmatpush3.bf16.msra.mxu1 %v1178_v10  ;;  %v144_v44 = vsub.f32 %v1648_v55, %v1873_v8  ;;  %v150_v23 = vsub.f32 %v1651_v6, %v1874_v47  ;;  %v1880_v24 = vand.u32 4294901760, %v1609_v37  ;;  %v1877_v34 = vand.u32 4294901760, %v1624_v18 }
  0x31   :  { %v1180_v3 = vpack.c.bf16 %v365_v2, %v358_v35  ;;  %v246_v19 = vand.u32 4294901760, %v245_v1  ;;  %v253_v9 = vand.u32 4294901760, %v252_v57  ;;  %v1190_v59 = vpack.c.bf16 %v1367_v21, %v1357_v15 }
  0x32   :  { %v145_v52 = vand.u32 4294901760, %v144_v44  ;;  %v151_v10 = vand.u32 4294901760, %v150_v23  ;;  %v371_v8 = vsub.f32 %v1609_v37, %v1880_v24  ;;  %v378_v47 = vsub.f32 %v1624_v18, %v1877_v34 }
  0x33   :  { %1181 = vmatprep.subr.bf16.mxu1 %v1180_v3  ;;  %v1182_v6 = vpack.c.bf16 %v253_v9, %v246_v19  ;;  %v1192_v35 = vpack.c.bf16 %v1380_v26, %v1378_v25  ;;  %v1879_v2 = vand.u32 4294901760, %v1630_v41  ;;  %v1878_v1 = vand.u32 4294901760, %v1662_v36 }
  0x34   :  { %146 = vmatprep.mubr.f32.mxu0 %v145_v52  ;;  %v372_v57 = vand.u32 4294901760, %v371_v8  ;;  %v379_v44 = vand.u32 4294901760, %v378_v47  ;;  %v1194_v19 = vpack.c.bf16 %v1397_v38, %v1384_v28  ;;  %v1196_v8 = vpack.c.bf16 %v1407_v43, %v1401_v40 }
  0x35   :  { %152 = vmatmul.mubr.f32.vlgmr.msra.gmra.mrb[0].mxu0 %v151_v10  ;;  %1183 = vmatpush3.bf16.msra.mxu1 %v1182_v6  ;;  %v259_v23 = vsub.f32 %v1630_v41, %v1879_v2  ;;  %v266_v9 = vsub.f32 %v1662_v36, %v1878_v1  ;;  %v1198_v6 = vpack.c.bf16 %v1436_v58, %v1412_v46  ;;  %v1886_v10 = vand.u32 4294901760, %v1387_v31 }
  0x36   :  { %1191 = vmatpush3.bf16.msra.mxu0 %v1190_v59  ;;  %v1184_v3 = vpack.c.bf16 %v379_v44, %v372_v57  ;;  %519 = vmatprep.mubr.f32.mxu0 %v1648_v55  ;;  %v1200_v47 = vpack.c.bf16 %v1461_v12, %v1440_v63  ;;  %v1887_v57 = vand.u32 4294901760, %v1389_v32  ;;  %v1888_v44 = vand.u32 4294901760, %v1357_v15 }
  0x37   :  { %1193 = vmatprep.subr.bf16.mxu0 %v1192_v35  ;;  %v260_v34 = vand.u32 4294901760, %v259_v23  ;;  %v267_v52 = vand.u32 4294901760, %v266_v9  ;;  %v1889_v23 = vand.u32 4294901760, %v1367_v21  ;;  %v1890_v1 = vand.u32 4294901760, %v1378_v25 }
  0x38   :  { %1185 = vmatprep.subr.bf16.mxu1 %v1184_v3  ;;  %v1252_v35 = vpack.c.bf16 %v1887_v57, %v1886_v10  ;;  %v1891_v3 = vand.u32 4294901760, %v1380_v26  ;;  %v1892_v24 = vand.u32 4294901760, %v1384_v28  ;;  %v1894_v31 = vand.u32 4294901760, %v1401_v40 }
  0x39   :  { %v1186_v59 = vpack.c.bf16 %v267_v52, %v260_v34  ;;  %v1254_v9 = vpack.c.bf16 %v1889_v23, %v1888_v44  ;;  %v1893_v34 = vand.u32 4294901760, %v1397_v38  ;;  %v1895_v32 = vand.u32 4294901760, %v1407_v43  ;;  %v1910_v23 = vld [vmem:[#allocation3_spill] sm:$0xff] }
  0x3a   :  { %v1256_v2 = vpack.c.bf16 %v1891_v3, %v1890_v1  ;;  %1195 = vmatpush3.bf16.msra.mxu0 %v1194_v19  ;;  %v1896_v15 = vand.u32 4294901760, %v1412_v46  ;;  %v1897_v21 = vand.u32 4294901760, %v1436_v58  ;;  %v1898_v25 = vand.u32 4294901760, %v1440_v63  ;;  %v1911_v3 = vld [vmem:[#allocation4_spill] sm:$0xff] }
  0x3b   :  { %v1258_v52 = vpack.c.bf16 %v1893_v34, %v1892_v24  ;;  %v1260_v10 = vpack.c.bf16 %v1895_v32, %v1894_v31  ;;  %v1899_v26 = vand.u32 4294901760, %v1461_v12  ;;  %1187 = vmatpush3.bf16.msra.mxu1 %v1186_v59  ;;  %1197 = vmatprep.subr.bf16.mxu0 %v1196_v8  ;;  %v1900_v28 = vand.u32 4294901760, %v1465_v17 }
  0x3c   :  { %v1262_v57 = vpack.c.bf16 %v1897_v21, %v1896_v15  ;;  %v1901_v38 = vand.u32 4294901760, %v1479_v42  ;;  %v1902_v43 = vand.u32 4294901760, %v1483_v50  ;;  %v1903_v24 = vand.u32 4294901760, %v1498_v60  ;;  %1221 = vmatprep.subr.bf16.mxu1 %v1355_v14 }
  0x3d   :  { %v1264_v1 = vpack.c.bf16 %v1899_v26, %v1898_v25  ;;  %v1904_v58 = vand.u32 4294901760, %v1507_v5  ;;  %v1905_v19 = vand.u32 4294901760, %v1521_v30  ;;  %v1202_v12 = vpack.c.bf16 %v1479_v42, %v1465_v17 }
  0x3e   :  { %v1266_v40 = vpack.c.bf16 %v1901_v38, %v1900_v28  ;;  %v1268_v46 = vpack.c.bf16 %v1903_v24, %v1902_v43  ;;  %384 = vmatmul.mubr.f32.vlgmr.msra.gmra.mrb[0].mxu1 %v1640_v13  ;;  %1199 = vmatpush3.bf16.msra.mxu0 %v1198_v6  ;;  %v1204_v8 = vpack.c.bf16 %v1498_v60, %v1483_v50  ;;  %v1906_v59 = vand.u32 4294901760, %v1648_v55  ;;  %v1907_v55 = vld [vmem:[#allocation6_spill] sm:$0xff]  ;;  %v1908_v6 = vld [vmem:[#allocation5_spill] sm:$0xff] }
  0x3f   :  { %v1270_v63 = vpack.c.bf16 %v1905_v19, %v1904_v58  ;;  %1223 = vmatpush3.bf16.msra.mxu1 %v1365_v20  ;;  %1201 = vmatprep.subr.bf16.mxu0 %v1200_v47  ;;  %v1206_v44 = vpack.c.bf16 %v1521_v30, %v1507_v5  ;;  %v1208_v17 = vpack.c.bf16 %v1540_v56, %v1525_v51  ;;  %v1909_v47 = vld [vmem:[#allocation2_spill] sm:$0xff]  ;;  %v1915_v34 = vand.u32 4294901760, %v1549_v0 }
  0x40   :  { %1225 = vmatprep.subr.bf16.mxu1 %v1369_v22  ;;  %626 = vmatprep.mubr.f32.mxu1 %v1906_v59  ;;  %v1210_v42 = vpack.c.bf16 %v1563_v61, %v1549_v0  ;;  %v1212_v50 = vpack.c.bf16 %v1582_v29, %v1567_v7  ;;  %v1214_v60 = vpack.c.bf16 %v1605_v53, %v1591_v54 }
  0x41   :  { %v1216_v5 = vpack.c.bf16 %v1624_v18, %v1609_v37  ;;  %v1218_v30 = vpack.c.bf16 %v1662_v36, %v1630_v41 }
  0x42   :  { %1203 = vmatpush3.bf16.msra.mxu0 %v1202_v12 }
  0x43   :  { %1227 = vmatpush3.bf16.msra.mxu1 %v1382_v27  ;;  %1205 = vmatprep.subr.bf16.mxu0 %v1204_v8 }
  0x44   :  { %1229 = vmatprep.subr.bf16.mxu1 %v1399_v39 }
  0x46   :  { %1207 = vmatpush3.bf16.msra.mxu0 %v1206_v44 }
  0x47   :  { %1231 = vmatpush3.bf16.msra.mxu1 %v1410_v45  ;;  %1209 = vmatprep.subr.bf16.mxu0 %v1208_v17 }
  0x48   :  { %1233 = vmatprep.subr.bf16.mxu1 %v1438_v62 }
  0x4a   :  { %1211 = vmatpush3.bf16.msra.mxu0 %v1210_v42 }
  0x4b   :  { %1235 = vmatpush3.bf16.msra.mxu1 %v1463_v16  ;;  %1213 = vmatprep.subr.bf16.mxu0 %v1212_v50 }
  0x4c   :  { %1237 = vmatprep.subr.bf16.mxu1 %v1481_v49 }
  0x4e   :  { %1215 = vmatpush3.bf16.msra.mxu0 %v1214_v60 }
  0x4f   :  { %1239 = vmatpush3.bf16.msra.mxu1 %v1505_v4  ;;  %1217 = vmatprep.subr.bf16.mxu0 %v1216_v5 }
  0x50   :  { %1241 = vmatprep.subr.bf16.mxu1 %v1523_v48 }
  0x52   :  { %1219 = vmatpush3.bf16.msra.mxu0 %v1218_v30 }
  0x53   :  { %1243 = vmatpush3.bf16.msra.mxu1 %v1547_v11  ;;  %1253 = vmatprep.subr.bf16.mxu0 %v1252_v35  ;;  %v1912_v35 = vand.u32 4294901760, %v1907_v55 }
  0x54   :  { %1245 = vmatprep.subr.bf16.mxu1 %v1565_v33 }
  0x55   :  { %522 = vmatmul.mubr.f32.vlgmr.msra.gmra.mrb[2].mxu0 %v1907_v55 }
  0x56   :  { %1255 = vmatpush3.bf16.msra.mxu0 %v1254_v9  ;;  %796 = vmatprep.mubr.f32.mxu0 %v1908_v6  ;;  %v1914_v9 = vand.u32 4294901760, %v1540_v56 }
  0x57   :  { %1247 = vmatpush3.bf16.msra.mxu1 %v1909_v47  ;;  %1257 = vmatprep.subr.bf16.mxu0 %v1256_v2  ;;  %v1913_v2 = vand.u32 4294901760, %v1525_v51  ;;  %v1919_v51 = vand.u32 4294901760, %v1591_v54 }
  0x58   :  { %1249 = vmatprep.subr.bf16.mxu1 %v1910_v23 }
  0x5a   :  { %1259 = vmatpush3.bf16.msra.mxu0 %v1258_v52 }
  0x5b   :  { %1251 = vmatpush3.bf16.msra.mxu1 %v1911_v3  ;;  %1261 = vmatprep.subr.bf16.mxu0 %v1260_v10 }
  0x5c   :  { %1285 = vmatprep.subr.bf16.mxu1 %v1355_v14  ;;  %v1272_v14 = vpack.c.bf16 %v1914_v9, %v1913_v2 }
  0x5e   :  { %630 = vmatmul.mubr.f32.vlgmr.msra.gmra.mrb[2].mxu1 %v1912_v35  ;;  %1263 = vmatpush3.bf16.msra.mxu0 %v1262_v57 }
  0x5f   :  { %1287 = vmatpush3.bf16.msra.mxu1 %v1365_v20  ;;  %1265 = vmatprep.subr.bf16.mxu0 %v1264_v1  ;;  %v1916_v20 = vand.u32 4294901760, %v1563_v61  ;;  %v1921_v61 = vand.u32 4294901760, %v1609_v37 }
  0x60   :  { %1289 = vmatprep.subr.bf16.mxu1 %v1369_v22  ;;  %900 = vmatprep.mubr.f32.mxu1 %v1908_v6  ;;  %v1917_v22 = vand.u32 4294901760, %v1567_v7  ;;  %v1923_v7 = vand.u32 4294901760, %v1630_v41 }
  0x61   :  { %v1274_v52 = vpack.c.bf16 %v1916_v20, %v1915_v34 }
  0x62   :  { %1267 = vmatpush3.bf16.msra.mxu0 %v1266_v40 }
  0x63   :  { %1291 = vmatpush3.bf16.msra.mxu1 %v1382_v27  ;;  %1269 = vmatprep.subr.bf16.mxu0 %v1268_v46  ;;  %v1918_v27 = vand.u32 4294901760, %v1582_v29 }
  0x64   :  { %1293 = vmatprep.subr.bf16.mxu1 %v1399_v39  ;;  %v1920_v39 = vand.u32 4294901760, %v1605_v53 }
  0x65   :  { %v1276_v31 = vpack.c.bf16 %v1918_v27, %v1917_v22 }
  0x66   :  { %1271 = vmatpush3.bf16.msra.mxu0 %v1270_v63  ;;  %v1278_v56 = vpack.c.bf16 %v1920_v39, %v1919_v51 }
  0x67   :  { %1295 = vmatpush3.bf16.msra.mxu1 %v1410_v45  ;;  %1273 = vmatprep.subr.bf16.mxu0 %v1272_v14  ;;  %v1922_v45 = vand.u32 4294901760, %v1624_v18 }
  0x68   :  { %1297 = vmatprep.subr.bf16.mxu1 %v1438_v62  ;;  %v1924_v62 = vand.u32 4294901760, %v1662_v36 }
  0x69   :  { %v1280_v0 = vpack.c.bf16 %v1922_v45, %v1921_v61 }
  0x6a   :  { %1275 = vmatpush3.bf16.msra.mxu0 %v1274_v52  ;;  %v1282_v29 = vpack.c.bf16 %v1924_v62, %v1923_v7 }
  0x6b   :  { %1299 = vmatpush3.bf16.msra.mxu1 %v1463_v16  ;;  %1277 = vmatprep.subr.bf16.mxu0 %v1276_v31 }
  0x6c   :  { %1301 = vmatprep.subr.bf16.mxu1 %v1481_v49 }
  0x6e   :  { %1279 = vmatpush3.bf16.msra.mxu0 %v1278_v56 }
  0x6f   :  { %1303 = vmatpush3.bf16.msra.mxu1 %v1505_v4  ;;  %1281 = vmatprep.subr.bf16.mxu0 %v1280_v0 }
  0x70   :  { %1305 = vmatprep.subr.bf16.mxu1 %v1523_v48 }
  0x72   :  { %1283 = vmatpush3.bf16.msra.mxu0 %v1282_v29 }
  0x73   :  { %1307 = vmatpush3.bf16.msra.mxu1 %v1547_v11 }
  0x74   :  { %1309 = vmatprep.subr.bf16.mxu1 %v1565_v33 }
  0x75   :  { %798 = vmatmul.mubr.f32.vlgmr.msra.gmra.mrb[4].mxu0 %v1640_v13 }
  0x77   :  { %1311 = vmatpush3.bf16.msra.mxu1 %v1909_v47 }
  0x78   :  { %1313 = vmatprep.subr.bf16.mxu1 %v1910_v23 }
  0x7b   :  { %1315 = vmatpush3.bf16.msra.mxu1 %v1911_v3 }
  0x7e   :  { %902 = vmatmul.mubr.f32.vlgmr.msra.gmra.mrb[4].mxu1 %v1640_v13 }
 0x108   :  { %v946_v41 = vpop.f32.mrb[0].mxu0 }
 0x109   :  { %v947_v53 = vpop.f32.mrb[1].mxu0 }
 0x10a   :  { %v948_v54 = vadd.f32 %v947_v53, %v946_v41 }
 0x111   :  { %v981_v16 = vpop.f32.mrb[0].mxu1 }
 0x112   :  { %v982_v49 = vpop.f32.mrb[1].mxu1 }
 0x113   :  { %v983_v4 = vadd.f32 %v982_v49, %v981_v16 }
 0x115   :  { %v386_v48 = vadd.f32 %v983_v4, %v948_v54 }
 0x128   :  { %v1016_v11 = vpop.f32.mrb[2].mxu0 }
 0x129   :  { %v1017_v37 = vpop.f32.mrb[3].mxu0 }
 0x12a   :  { %v1018_v33 = vadd.f32 %v1017_v37, %v1016_v11 }
 0x12c   :  { %v524_v18 = vadd.f32 %v1018_v33, %v386_v48 }
 0x131   :  { %v1051_v36 = vpop.f32.mrb[2].mxu1 }
 0x132   :  { %v1052_v32 = vpop.f32.mrb[3].mxu1 }
 0x133   :  { %v1053_v10 = vadd.f32 %v1052_v32, %v1051_v36 }
 0x135   :  { %v632_v15 = vadd.f32 %v1053_v10, %v524_v18 }
 0x148   :  { %v1086_v21 = vpop.f32.mrb[4].mxu0 }
 0x149   :  { %v1087_v57 = vpop.f32.mrb[5].mxu0 }
 0x14a   :  { %v1088_v25 = vadd.f32 %v1087_v57, %v1086_v21 }
 0x14c   :  { %v800_v26 = vadd.f32 %v1088_v25, %v632_v15 }
 0x151   :  { %v1121_v13 = vpop.f32.mrb[4].mxu1 }
 0x152   :  { %v1122_v1 = vpop.f32.mrb[5].mxu1 }
 0x153   :  { %v1123_v28 = vadd.f32 %v1122_v1, %v1121_v13 }
 0x155   :  { %v904_v38 = vadd.f32 %v1123_v28, %v800_v26 }
 0x157   :  { %v907_v40 = vmul.f32 0.0625, %v904_v38 }
 0x159   :  { %909 = vst.msk [vmem:[%s1836_s2] sm:$0xff] %vm908_vm0, %v907_v40 }

</bundles_post_ra>
